<compile_context>
chip_gen: v7x
topology: tpu7x:2x2x1
jax: 0.10.0
libtpu: 0.0.40
codegen_flags: <defaults>
</compile_context>

<pallas_src>
import jax
import jax.numpy as jnp
from jax import lax
from jax.experimental import pallas as pl
from jax.experimental.pallas import tpu as pltpu


# ----------------------------------------------------------------------------
# Fused kernel: one grid step per batch block, all heads + output projection.
# ----------------------------------------------------------------------------
def _mha_kernel(x_ref, wqkv_ref, bqkv_ref, wout_ref, bout_ref,
                out_ref, kv_ref, multi_ref):
    bb, seq, d = x_ref.shape
    num_heads = kv_ref.shape[0] // 2
    hidden = kv_ref.shape[3]
    nhh = num_heads * hidden

    # Fused (input-linear o QKV) projection for ALL heads: one wide bf16 MXU
    # matmul with f32 accumulation; M = Bb*S rows fills the MXU M dimension.
    x2d = x_ref[...].reshape(bb * seq, d).astype(jnp.bfloat16)
    qkv = (jnp.dot(x2d, wqkv_ref[...], preferred_element_type=jnp.float32)
           + bqkv_ref[...])                                   # (Bb*S, 3*NH*H) f32
    qkv = qkv.reshape(bb, seq, 3 * nhh)

    # Causal mask, hoisted out of the head loop (computed once per grid step).
    row = lax.broadcasted_iota(jnp.int32, (seq, seq), 0)
    col = lax.broadcasted_iota(jnp.int32, (seq, seq), 1)
    causal = (col > row)[None]                                # (1, S, S)
    neg_big = jnp.float32(-1e30)                              # finite "-inf"

    for h in range(num_heads):                                # small static unroll
        q = qkv[:, :, h * hidden:(h + 1) * hidden]
        k = qkv[:, :, nhh + h * hidden: nhh + (h + 1) * hidden]
        v = qkv[:, :, 2 * nhh + h * hidden: 2 * nhh + (h + 1) * hidden]

        # KV-cache writeback straight from the projection (no concat, frees
        # k/v right away).  Layout: [K_0, V_0, K_1, V_1, ...] on axis 0.
        kv_ref[2 * h] = k
        kv_ref[2 * h + 1] = v

        # I = Q @ K^T   (no 1/sqrt(H) scaling — matches the PyTorch module)
        scores = jnp.einsum('bqh,bkh->bqk',
                            q.astype(jnp.bfloat16), k.astype(jnp.bfloat16),
                            preferred_element_type=jnp.float32)   # (Bb, S, S)
        scores = jnp.where(causal, neg_big, scores)

        # Numerically-stable softmax, kept in f32 (no bf16 VPU/EUP on v5e).
        m = jnp.max(scores, axis=-1, keepdims=True)
        e = jnp.exp(scores - m)
        denom = jnp.sum(e, axis=-1, keepdims=True)
        p = e * pl.reciprocal(denom, approx=True)

        f_h = jnp.einsum('bqk,bkh->bqh',
                         p.astype(jnp.bfloat16), v.astype(jnp.bfloat16),
                         preferred_element_type=jnp.float32)      # (Bb, S, H)
        # Lane-offset store into the head-concat scratch (static-slice view).
        multi_ref[:, :, h * hidden:(h + 1) * hidden] = f_h.astype(jnp.bfloat16)

    # Output projection over all heads: one wide bf16 matmul, f32 accumulate.
    multi2d = multi_ref[...].reshape(bb * seq, nhh)
    out2d = (jnp.dot(multi2d, wout_ref[...], preferred_element_type=jnp.float32)
             + bout_ref[...])
    out_ref[...] = out2d.reshape(bb, seq, d)


# ----------------------------------------------------------------------------
# Wrapper
# ----------------------------------------------------------------------------
def _pick_block_b(batch, seq):
    """Batch elements per grid step: fill MXU M (~256 rows) but keep >=2
    'parallel' grid steps when the batch allows it (v7x has 2 TensorCores)."""
    bb = min(batch, max(1, 256 // max(seq, 1)))
    while batch % bb:
        bb -= 1
    if batch // bb < 2 and batch >= 2:
        bb = max(1, batch // 2)
        while batch % bb:
            bb -= 1
    return bb


@jax.jit
def multi_attention_forward(x, params):
    """x: (B, S, D) float32.  Returns (out (B,S,D), kv_caches (NH,2,B,S,H))."""
    w_lin, b_lin, w_q, w_k, w_v, w_out, b_out = (
        params["w_lin"], params["b_lin"], params["w_q"], params["w_k"],
        params["w_v"], params["w_out"], params["b_out"])

    B, S, D = x.shape
    NH, _, H = w_q.shape
    NHH = NH * H
    Bb = _pick_block_b(B, S)

    # ---- one-time weight prep (hoisted out of the kernel) -------------------
    # Fold the per-head input linear into the QKV projection:
    #   Q = (x @ Wl^T + bl) @ Wq = x @ (Wl^T @ Wq) + bl @ Wq   (same for K, V)
    w_lin_t = jnp.transpose(w_lin, (0, 2, 1))                 # (NH, D, D)

    def _fold(w):
        wf = jnp.einsum('hij,hjk->hik', w_lin_t, w)           # (NH, D, H)
        bf = jnp.einsum('hoj,hjk->hok', b_lin, w)             # (NH, 1, H)
        return (wf.transpose(1, 0, 2).reshape(D, NHH),        # head h -> cols h*H:(h+1)*H
                bf.transpose(1, 0, 2).reshape(1, NHH))

    wq_f, bq_f = _fold(w_q)
    wk_f, bk_f = _fold(w_k)
    wv_f, bv_f = _fold(w_v)
    # Layout: [Q all heads | K all heads | V all heads]
    w_qkv = jnp.concatenate([wq_f, wk_f, wv_f], -1).astype(jnp.bfloat16)  # (D, 3*NH*H)
    b_qkv = jnp.concatenate([bq_f, bk_f, bv_f], -1)                       # (1, 3*NH*H) f32
    w_out_t = w_out.T.astype(jnp.bfloat16)                                # (NH*H, D)

    # ---- explicit VMEM budget ------------------------------------------------
    weights_b = w_qkv.size * 2 + w_out_t.size * 2 + (b_qkv.size + b_out.size) * 4
    io_b = 2 * (Bb * S * D * 4) * 2 + 2 * (2 * NH * Bb * S * H * 4)  # dbl-buffered x/out/kv
    work_b = (Bb * S * 3 * NHH * 4          # qkv intermediate
              + 3 * Bb * S * S * 4          # scores / exp / probs
              + Bb * S * NHH * 2)           # head-concat scratch
    vmem_limit = int(min(48 * 2 ** 20,
                         max(16 * 2 ** 20, 2 * (weights_b + io_b + work_b))))

    out, kv = pl.pallas_call(
        _mha_kernel,
        out_shape=(
            jax.ShapeDtypeStruct((B, S, D), jnp.float32),
            jax.ShapeDtypeStruct((2 * NH, B, S, H), jnp.float32),
        ),
        grid_spec=pltpu.PrefetchScalarGridSpec(
            num_scalar_prefetch=0,
            grid=(B // Bb,),
            in_specs=[
                pl.BlockSpec((Bb, S, D), lambda b: (b, 0, 0)),        # x
                pl.BlockSpec((D, 3 * NHH), lambda b: (0, 0)),         # fused W_qkv (bf16)
                pl.BlockSpec((1, 3 * NHH), lambda b: (0, 0)),         # fused b_qkv
                pl.BlockSpec((NHH, D), lambda b: (0, 0)),             # W_out^T (bf16)
                pl.BlockSpec((1, D), lambda b: (0, 0)),               # b_out
            ],
            out_specs=[
                pl.BlockSpec((Bb, S, D), lambda b: (b, 0, 0)),            # out
                pl.BlockSpec((2 * NH, Bb, S, H), lambda b: (0, b, 0, 0)),  # KV
            ],
            scratch_shapes=[pltpu.VMEM((Bb, S, NHH), jnp.bfloat16)],
        ),
        compiler_params=pltpu.CompilerParams(
            dimension_semantics=("parallel",),
            vmem_limit_bytes=vmem_limit),
    )(x, w_qkv, b_qkv, w_out_t, b_out)

    # (2*NH, B, S, H) -> (NH, 2, B, S, H): leading-dim split, metadata-only
    # (no HBM round trip, unlike the previous reshape+transpose repack).
    kv_caches = kv.reshape(NH, 2, B, S, H)
    return out, kv_caches


# ----------------------------------------------------------------------------
# Pure-JAX reference (module semantics, f32 end-to-end).
# ----------------------------------------------------------------------------
def _reference(x, params):
    w_lin, b_lin = params["w_lin"], params["b_lin"]
    w_q, w_k, w_v = params["w_q"], params["w_k"], params["w_v"]
    w_out, b_out = params["w_out"], params["b_out"]
    B, S, D = x.shape
    NH, _, H = w_q.shape
    mask = jnp.triu(jnp.ones((S, S), dtype=bool), k=1)
    f_list, kv_list = [], []
    for h in range(NH):
        x_ = x @ w_lin[h].T + b_lin[h]
        q, k, v = x_ @ w_q[h], x_ @ w_k[h], x_ @ w_v[h]
        scores = jnp.einsum("bsh,bth->bst", q, k)
        scores = jnp.where(mask[None], -jnp.inf, scores)
        p = jax.nn.softmax(scores, axis=-1)
        f_list.append(jnp.einsum("bst,bth->bsh", p, v))
        kv_list.append(jnp.stack([k, v]))
    multi = jnp.concatenate(f_list, axis=-1)
    return multi @ w_out.T + b_out, jnp.stack(kv_list)


if __name__ == "__main__":
    # Small shapes consistent with the module.
    B, S = 2, 8
    input_sz, hidden_sz, num_heads = 32, 32, 2

    key = jax.random.PRNGKey(0)
    ks = jax.random.split(key, 8)
    scale = 0.1
    params = {
        # per-head parameters stacked on a leading head axis
        "w_lin": scale * jax.random.normal(ks[0], (num_heads, input_sz, input_sz), jnp.float32),
        "b_lin": scale * jax.random.normal(ks[1], (num_heads, 1, input_sz), jnp.float32),
        "w_q":   scale * jax.random.normal(ks[2], (num_heads, input_sz, hidden_sz), jnp.float32),
        "w_k":   scale * jax.random.normal(ks[3], (num_heads, input_sz, hidden_sz), jnp.float32),
        "w_v":   scale * jax.random.normal(ks[4], (num_heads, input_sz, hidden_sz), jnp.float32),
        # output projection: nn.Linear(num_heads*hidden_sz, input_sz)
        "w_out": scale * jax.random.normal(ks[5], (input_sz, num_heads * hidden_sz), jnp.float32),
        "b_out": scale * jax.random.normal(ks[6], (1, input_sz), jnp.float32),
    }

    x = jax.random.normal(ks[7], (B, S, input_sz), jnp.float32)

    out, kv_caches = multi_attention_forward(x, params)
    out = jax.block_until_ready(out)
    kv_caches = jax.block_until_ready(kv_caches)

    ref_out, ref_kv = _reference(x, params)
    assert out.shape == (B, S, input_sz)
    assert kv_caches.shape == (num_heads, 2, B, S, hidden_sz)
    # bf16 MXU operands + folded weights change rounding slightly vs the f32
    # reference, hence the loosened tolerance (values here are O(0.1-1)).
    assert jnp.allclose(out, ref_out, atol=2e-2, rtol=2e-2)
    assert jnp.allclose(kv_caches, ref_kv, atol=2e-2, rtol=2e-2)

    print("KERNEL_OK")
</pallas_src>

<mosaic_0001>
module attributes {stable_mosaic.version = 11 : i64} {
  func.func @_mha_kernel(%arg0: i32, %arg1: memref<1x8x32xf32, #tpu.memory_space<vmem>>, %arg2: memref<32x192xbf16, #tpu.memory_space<vmem>>, %arg3: memref<1x192xf32, #tpu.memory_space<vmem>>, %arg4: memref<64x32xbf16, #tpu.memory_space<vmem>>, %arg5: memref<1x32xf32, #tpu.memory_space<vmem>>, %arg6: memref<1x8x32xf32, #tpu.memory_space<vmem>>, %arg7: memref<4x1x8x32xf32, #tpu.memory_space<vmem>>, %arg8: memref<1x8x64xbf16, #tpu.memory_space<vmem>>) attributes {dimension_semantics = [#tpu.dimension_semantics<parallel>], iteration_bounds = array<i64: 2>, scalar_prefetch = 0 : i64, scratch_operands = 1 : i64, tpu.core_type = #tpu.core_type<tc>, window_params = [{transform_indices = @transform_0, window_bounds = array<i64: 1, 8, 32>}, {pipeline_mode = #tpu.pipeline_mode<synchronous>, transform_indices = @transform_1, window_bounds = array<i64: 32, 192>}, {pipeline_mode = #tpu.pipeline_mode<synchronous>, transform_indices = @transform_2, window_bounds = array<i64: 1, 192>}, {pipeline_mode = #tpu.pipeline_mode<synchronous>, transform_indices = @transform_3, window_bounds = array<i64: 64, 32>}, {pipeline_mode = #tpu.pipeline_mode<synchronous>, transform_indices = @transform_4, window_bounds = array<i64: 1, 32>}, {transform_indices = @transform_5, window_bounds = array<i64: 1, 8, 32>}, {transform_indices = @transform_6, window_bounds = array<i64: 4, 1, 8, 32>}]} {
    %c0 = arith.constant 0 : index
    %c0_0 = arith.constant 0 : index
    %c0_1 = arith.constant 0 : index
    %0 = vector.load %arg1[%c0, %c0_0, %c0_1] : memref<1x8x32xf32, #tpu.memory_space<vmem>>, vector<1x8x32xf32>
    %1 = vector.shape_cast %0 : vector<1x8x32xf32> to vector<8x32xf32>
    %2 = arith.truncf %1 : vector<8x32xf32> to vector<8x32xbf16>
    %c0_2 = arith.constant 0 : index
    %c0_3 = arith.constant 0 : index
    %3 = vector.load %arg2[%c0_2, %c0_3] : memref<32x192xbf16, #tpu.memory_space<vmem>>, vector<32x192xbf16>
    %cst = arith.constant dense<0.000000e+00> : vector<8x192xf32>
    %4 = tpu.matmul %2, %3, %cst {dimension_numbers = #tpu.dot_dimension_numbers<[1], [0], [0], [1], [0, 0, 1, 1], [], []>} : vector<8x32xbf16>, vector<32x192xbf16>, vector<8x192xf32> -> vector<8x192xf32>
    %c0_4 = arith.constant 0 : index
    %c0_5 = arith.constant 0 : index
    %5 = vector.load %arg3[%c0_4, %c0_5] : memref<1x192xf32, #tpu.memory_space<vmem>>, vector<1x192xf32>
    %6 = vector.broadcast %5 : vector<1x192xf32> to vector<8x192xf32>
    %7 = arith.addf %4, %6 : vector<8x192xf32>
    %8 = vector.shape_cast %7 : vector<8x192xf32> to vector<1x8x192xf32>
    %9 = tpu.iota {dimensions = array<i32: 0>} : vector<8x8xi32>
    %10 = tpu.iota {dimensions = array<i32: 1>} : vector<8x8xi32>
    %11 = arith.cmpi sgt, %10, %9 : vector<8x8xi32>
    %12 = vector.shape_cast %11 : vector<8x8xi1> to vector<1x8x8xi1>
    %13 = vector.extract_strided_slice %8 {offsets = [0, 0, 0], sizes = [1, 8, 32], strides = [1, 1, 1]} : vector<1x8x192xf32> to vector<1x8x32xf32>
    %14 = vector.extract_strided_slice %8 {offsets = [0, 0, 64], sizes = [1, 8, 32], strides = [1, 1, 1]} : vector<1x8x192xf32> to vector<1x8x32xf32>
    %15 = vector.extract_strided_slice %8 {offsets = [0, 0, 128], sizes = [1, 8, 32], strides = [1, 1, 1]} : vector<1x8x192xf32> to vector<1x8x32xf32>
    %c0_6 = arith.constant 0 : index
    %c0_7 = arith.constant 0 : index
    %c0_8 = arith.constant 0 : index
    %c0_9 = arith.constant 0 : index
    %16 = vector.load %arg7[%c0_6, %c0_7, %c0_8, %c0_9] : memref<4x1x8x32xf32, #tpu.memory_space<vmem>>, vector<1x1x8x32xf32>
    %17 = vector.shape_cast %16 : vector<1x1x8x32xf32> to vector<1x8x32xf32>
    %18 = vector.shape_cast %14 : vector<1x8x32xf32> to vector<1x1x8x32xf32>
    tpu.vector_store %arg7[%c0_6, %c0_7, %c0_8, %c0_9], %18 {strides = array<i32>} : memref<4x1x8x32xf32, #tpu.memory_space<vmem>>, vector<1x1x8x32xf32>,
    %c1 = arith.constant 1 : index
    %c0_10 = arith.constant 0 : index
    %c0_11 = arith.constant 0 : index
    %c0_12 = arith.constant 0 : index
    %19 = vector.load %arg7[%c1, %c0_10, %c0_11, %c0_12] : memref<4x1x8x32xf32, #tpu.memory_space<vmem>>, vector<1x1x8x32xf32>
    %20 = vector.shape_cast %19 : vector<1x1x8x32xf32> to vector<1x8x32xf32>
    %21 = vector.shape_cast %15 : vector<1x8x32xf32> to vector<1x1x8x32xf32>
    tpu.vector_store %arg7[%c1, %c0_10, %c0_11, %c0_12], %21 {strides = array<i32>} : memref<4x1x8x32xf32, #tpu.memory_space<vmem>>, vector<1x1x8x32xf32>,
    %22 = arith.truncf %13 : vector<1x8x32xf32> to vector<1x8x32xbf16>
    %23 = arith.truncf %14 : vector<1x8x32xf32> to vector<1x8x32xbf16>
    "tpu.trace_start"() <{level = 10 : i32, message = "bqh,bkh->bqk"}> : () -> ()
    %cst_13 = arith.constant dense<0.000000e+00> : vector<1x8x8xf32>
    %24 = tpu.matmul %22, %23, %cst_13 {dimension_numbers = #tpu.dot_dimension_numbers<[2], [2], [1], [1], [0, 0, 0, 1, 1, 1], [0], [0]>} : vector<1x8x32xbf16>, vector<1x8x32xbf16>, vector<1x8x8xf32> -> vector<1x8x8xf32>
    %cst_14 = arith.constant -1.000000e+30 : f32
    "tpu.trace_stop"() : () -> ()
    %25 = vector.broadcast %cst_14 : f32 to vector<1x8x8xf32>
    %26 = arith.select %12, %25, %24 : vector<1x8x8xi1>, vector<1x8x8xf32>
    %cst_15 = arith.constant dense<0xFF800000> : vector<1x8xf32>
    %27 = vector.multi_reduction <maximumf>, %26, %cst_15 [2] : vector<1x8x8xf32> to vector<1x8xf32>
    %28 = vector.shape_cast %27 : vector<1x8xf32> to vector<1x8x1xf32>
    %29 = vector.broadcast %28 : vector<1x8x1xf32> to vector<1x8x8xf32>
    %30 = arith.subf %26, %29 : vector<1x8x8xf32>
    %31 = math.exp %30 : vector<1x8x8xf32>
    %cst_16 = arith.constant dense<0.000000e+00> : vector<1x8xf32>
    %32 = vector.multi_reduction <add>, %31, %cst_16 [2] : vector<1x8x8xf32> to vector<1x8xf32>
    %33 = vector.shape_cast %32 : vector<1x8xf32> to vector<1x8x1xf32>
    %34 = tpu.reciprocal %33 {approx = true} : vector<1x8x1xf32> -> vector<1x8x1xf32>
    %35 = vector.broadcast %34 : vector<1x8x1xf32> to vector<1x8x8xf32>
    %36 = arith.mulf %31, %35 : vector<1x8x8xf32>
    %37 = arith.truncf %36 : vector<1x8x8xf32> to vector<1x8x8xbf16>
    %38 = arith.truncf %15 : vector<1x8x32xf32> to vector<1x8x32xbf16>
    "tpu.trace_start"() <{level = 10 : i32, message = "bqk,bkh->bqh"}> : () -> ()
    %cst_17 = arith.constant dense<0.000000e+00> : vector<1x8x32xf32>
    %39 = tpu.matmul %37, %38, %cst_17 {dimension_numbers = #tpu.dot_dimension_numbers<[2], [1], [1], [2], [0, 0, 0, 1, 1, 2], [0], [0]>} : vector<1x8x8xbf16>, vector<1x8x32xbf16>, vector<1x8x32xf32> -> vector<1x8x32xf32>
    "tpu.trace_stop"() : () -> ()
    %40 = arith.truncf %39 : vector<1x8x32xf32> to vector<1x8x32xbf16>
    %c0_18 = arith.constant 0 : index
    %c0_19 = arith.constant 0 : index
    %c0_20 = arith.constant 0 : index
    %41 = vector.load %arg8[%c0_18, %c0_19, %c0_20] : memref<1x8x64xbf16, #tpu.memory_space<vmem>>, vector<1x8x32xbf16>
    tpu.vector_store %arg8[%c0_18, %c0_19, %c0_20], %40 {strides = array<i32>} : memref<1x8x64xbf16, #tpu.memory_space<vmem>>, vector<1x8x32xbf16>,
    %42 = vector.extract_strided_slice %8 {offsets = [0, 0, 32], sizes = [1, 8, 32], strides = [1, 1, 1]} : vector<1x8x192xf32> to vector<1x8x32xf32>
    %43 = vector.extract_strided_slice %8 {offsets = [0, 0, 96], sizes = [1, 8, 32], strides = [1, 1, 1]} : vector<1x8x192xf32> to vector<1x8x32xf32>
    %44 = vector.extract_strided_slice %8 {offsets = [0, 0, 160], sizes = [1, 8, 32], strides = [1, 1, 1]} : vector<1x8x192xf32> to vector<1x8x32xf32>
    %c2 = arith.constant 2 : index
    %c0_21 = arith.constant 0 : index
    %c0_22 = arith.constant 0 : index
    %c0_23 = arith.constant 0 : index
    %45 = vector.load %arg7[%c2, %c0_21, %c0_22, %c0_23] : memref<4x1x8x32xf32, #tpu.memory_space<vmem>>, vector<1x1x8x32xf32>
    %46 = vector.shape_cast %45 : vector<1x1x8x32xf32> to vector<1x8x32xf32>
    %47 = vector.shape_cast %43 : vector<1x8x32xf32> to vector<1x1x8x32xf32>
    tpu.vector_store %arg7[%c2, %c0_21, %c0_22, %c0_23], %47 {strides = array<i32>} : memref<4x1x8x32xf32, #tpu.memory_space<vmem>>, vector<1x1x8x32xf32>,
    %c3 = arith.constant 3 : index
    %c0_24 = arith.constant 0 : index
    %c0_25 = arith.constant 0 : index
    %c0_26 = arith.constant 0 : index
    %48 = vector.load %arg7[%c3, %c0_24, %c0_25, %c0_26] : memref<4x1x8x32xf32, #tpu.memory_space<vmem>>, vector<1x1x8x32xf32>
    %49 = vector.shape_cast %48 : vector<1x1x8x32xf32> to vector<1x8x32xf32>
    %50 = vector.shape_cast %44 : vector<1x8x32xf32> to vector<1x1x8x32xf32>
    tpu.vector_store %arg7[%c3, %c0_24, %c0_25, %c0_26], %50 {strides = array<i32>} : memref<4x1x8x32xf32, #tpu.memory_space<vmem>>, vector<1x1x8x32xf32>,
    %51 = arith.truncf %42 : vector<1x8x32xf32> to vector<1x8x32xbf16>
    %52 = arith.truncf %43 : vector<1x8x32xf32> to vector<1x8x32xbf16>
    "tpu.trace_start"() <{level = 10 : i32, message = "bqh,bkh->bqk"}> : () -> ()
    %cst_27 = arith.constant dense<0.000000e+00> : vector<1x8x8xf32>
    %53 = tpu.matmul %51, %52, %cst_27 {dimension_numbers = #tpu.dot_dimension_numbers<[2], [2], [1], [1], [0, 0, 0, 1, 1, 1], [0], [0]>} : vector<1x8x32xbf16>, vector<1x8x32xbf16>, vector<1x8x8xf32> -> vector<1x8x8xf32>
    %cst_28 = arith.constant -1.000000e+30 : f32
    "tpu.trace_stop"() : () -> ()
    %54 = vector.broadcast %cst_28 : f32 to vector<1x8x8xf32>
    %55 = arith.select %12, %54, %53 : vector<1x8x8xi1>, vector<1x8x8xf32>
    %cst_29 = arith.constant dense<0xFF800000> : vector<1x8xf32>
    %56 = vector.multi_reduction <maximumf>, %55, %cst_29 [2] : vector<1x8x8xf32> to vector<1x8xf32>
    %57 = vector.shape_cast %56 : vector<1x8xf32> to vector<1x8x1xf32>
    %58 = vector.broadcast %57 : vector<1x8x1xf32> to vector<1x8x8xf32>
    %59 = arith.subf %55, %58 : vector<1x8x8xf32>
    %60 = math.exp %59 : vector<1x8x8xf32>
    %cst_30 = arith.constant dense<0.000000e+00> : vector<1x8xf32>
    %61 = vector.multi_reduction <add>, %60, %cst_30 [2] : vector<1x8x8xf32> to vector<1x8xf32>
    %62 = vector.shape_cast %61 : vector<1x8xf32> to vector<1x8x1xf32>
    %63 = tpu.reciprocal %62 {approx = true} : vector<1x8x1xf32> -> vector<1x8x1xf32>
    %64 = vector.broadcast %63 : vector<1x8x1xf32> to vector<1x8x8xf32>
    %65 = arith.mulf %60, %64 : vector<1x8x8xf32>
    %66 = arith.truncf %65 : vector<1x8x8xf32> to vector<1x8x8xbf16>
    %67 = arith.truncf %44 : vector<1x8x32xf32> to vector<1x8x32xbf16>
    "tpu.trace_start"() <{level = 10 : i32, message = "bqk,bkh->bqh"}> : () -> ()
    %cst_31 = arith.constant dense<0.000000e+00> : vector<1x8x32xf32>
    %68 = tpu.matmul %66, %67, %cst_31 {dimension_numbers = #tpu.dot_dimension_numbers<[2], [1], [1], [2], [0, 0, 0, 1, 1, 2], [0], [0]>} : vector<1x8x8xbf16>, vector<1x8x32xbf16>, vector<1x8x32xf32> -> vector<1x8x32xf32>
    "tpu.trace_stop"() : () -> ()
    %69 = arith.truncf %68 : vector<1x8x32xf32> to vector<1x8x32xbf16>
    %c0_32 = arith.constant 0 : index
    %c0_33 = arith.constant 0 : index
    %c32 = arith.constant 32 : index
    %70 = vector.load %arg8[%c0_32, %c0_33, %c32] : memref<1x8x64xbf16, #tpu.memory_space<vmem>>, vector<1x8x32xbf16>
    tpu.vector_store %arg8[%c0_32, %c0_33, %c32], %69 {strides = array<i32>} : memref<1x8x64xbf16, #tpu.memory_space<vmem>>, vector<1x8x32xbf16>,
    %c0_34 = arith.constant 0 : index
    %c0_35 = arith.constant 0 : index
    %c0_36 = arith.constant 0 : index
    %71 = vector.load %arg8[%c0_34, %c0_35, %c0_36] : memref<1x8x64xbf16, #tpu.memory_space<vmem>>, vector<1x8x64xbf16>
    %72 = vector.shape_cast %71 : vector<1x8x64xbf16> to vector<8x64xbf16>
    %c0_37 = arith.constant 0 : index
    %c0_38 = arith.constant 0 : index
    %73 = vector.load %arg4[%c0_37, %c0_38] : memref<64x32xbf16, #tpu.memory_space<vmem>>, vector<64x32xbf16>
    %cst_39 = arith.constant dense<0.000000e+00> : vector<8x32xf32>
    %74 = tpu.matmul %72, %73, %cst_39 {dimension_numbers = #tpu.dot_dimension_numbers<[1], [0], [0], [1], [0, 0, 1, 1], [], []>} : vector<8x64xbf16>, vector<64x32xbf16>, vector<8x32xf32> -> vector<8x32xf32>
    %c0_40 = arith.constant 0 : index
    %c0_41 = arith.constant 0 : index
    %75 = vector.load %arg5[%c0_40, %c0_41] : memref<1x32xf32, #tpu.memory_space<vmem>>, vector<1x32xf32>
    %76 = vector.broadcast %75 : vector<1x32xf32> to vector<8x32xf32>
    %77 = arith.addf %74, %76 : vector<8x32xf32>
    %78 = vector.shape_cast %77 : vector<8x32xf32> to vector<1x8x32xf32>
    %c0_42 = arith.constant 0 : index
    %c0_43 = arith.constant 0 : index
    %c0_44 = arith.constant 0 : index
    %79 = vector.load %arg6[%c0_42, %c0_43, %c0_44] : memref<1x8x32xf32, #tpu.memory_space<vmem>>, vector<1x8x32xf32>
    tpu.vector_store %arg6[%c0_42, %c0_43, %c0_44], %78 {strides = array<i32>} : memref<1x8x32xf32, #tpu.memory_space<vmem>>, vector<1x8x32xf32>,
    return
  }
  func.func @transform_0(%arg0: i32) -> (i32, i32, i32) {
    %c0_i32 = arith.constant 0 : i32
    %c0_i32_0 = arith.constant 0 : i32
    %c0_i32_1 = arith.constant 0 : i32
    return %arg0, %c0_i32, %c0_i32_0 : i32, i32, i32
  }
  func.func @transform_1(%arg0: i32) -> (i32, i32) {
    %c0_i32 = arith.constant 0 : i32
    %c0_i32_0 = arith.constant 0 : i32
    %c0_i32_1 = arith.constant 0 : i32
    return %c0_i32, %c0_i32_0 : i32, i32
  }
  func.func @transform_2(%arg0: i32) -> (i32, i32) {
    %c0_i32 = arith.constant 0 : i32
    %c0_i32_0 = arith.constant 0 : i32
    %c0_i32_1 = arith.constant 0 : i32
    return %c0_i32, %c0_i32_0 : i32, i32
  }
  func.func @transform_3(%arg0: i32) -> (i32, i32) {
    %c0_i32 = arith.constant 0 : i32
    %c0_i32_0 = arith.constant 0 : i32
    %c0_i32_1 = arith.constant 0 : i32
    return %c0_i32, %c0_i32_0 : i32, i32
  }
  func.func @transform_4(%arg0: i32) -> (i32, i32) {
    %c0_i32 = arith.constant 0 : i32
    %c0_i32_0 = arith.constant 0 : i32
    %c0_i32_1 = arith.constant 0 : i32
    return %c0_i32, %c0_i32_0 : i32, i32
  }
  func.func @transform_5(%arg0: i32) -> (i32, i32, i32) {
    %c0_i32 = arith.constant 0 : i32
    %c0_i32_0 = arith.constant 0 : i32
    %c0_i32_1 = arith.constant 0 : i32
    return %arg0, %c0_i32, %c0_i32_0 : i32, i32, i32
  }
  func.func @transform_6(%arg0: i32) -> (i32, i32, i32, i32) {
    %c0_i32 = arith.constant 0 : i32
    %c0_i32_0 = arith.constant 0 : i32
    %c0_i32_1 = arith.constant 0 : i32
    %c0_i32_2 = arith.constant 0 : i32
    return %c0_i32, %arg0, %c0_i32_0, %c0_i32_1 : i32, i32, i32, i32
  }
}

</mosaic_0001>

<bundles_post_ra>
// kernel: multi_attention_forward.1
= control target key start
LH: loop header
LB: loop body
LE: loop exit
PB: predicated region body
PF: predicated region fallthrough
CT: control target
= control target key end

     0   :  { %s1339_s0 = inlined_call_operand.vmem [shape: f32[2,8,32], index: 0, kind: input, shape index: {}]   ;;  %s1340_s1 = inlined_call_operand.vmem [shape: bf16[32,192], index: 1, kind: input, shape index: {}]   ;;  %s1341_s2 = inlined_call_operand.vmem [shape: f32[1,192], index: 2, kind: input, shape index: {}]   ;;  %s1342_s3 = inlined_call_operand.vmem [shape: bf16[64,32], index: 3, kind: input, shape index: {}]   ;;  %s1343_s4 = inlined_call_operand.vmem [shape: f32[1,32], index: 4, kind: input, shape index: {}]   ;;  %s1344_s5 = inlined_call_operand.hbm [shape: f32[2,8,32], index: 5, kind: output, shape index: {0}]   ;;  %s1345_s6 = inlined_call_operand.hbm [shape: f32[4,2,8,32], index: 6, kind: output, shape index: {1}]  }
   0x1   :  { %1346 = sst [smem:[#allocation9_spill]] %s1339_s0 }
   0x2   :  { %12 = vsyncpa [#allocation4], 0 }
   0x3   :  { %14 = vsyncpa [#allocation4 + $0x1], 0 }
   0x4   :  { %15 = vsyncpa [#allocation6], 0 }
   0x5   :  { %17 = vsyncpa [#allocation6 + $0x1], 0  ;;  %s1106_s21 = smov 0   ;;  %s1108_s22 = smov 0  }
   0x6   :  { %s1110_s23 = smov 0   ;;  %s1112_s24 = smov 0  }
   0x7 LB: > { %s1127_s25 = sadd.s32 4294967295, %s1058_s24   ;;  %s811_s26 = sadd.s32 4294967294, %s1058_s24   ;;  %s1058_s24 = sphi %s1112_s24, %s1353_s24   ;;  %s1054_s23 = sphi %s1110_s23, %s1352_s23   ;;  %s1050_s22 = sphi %s1108_s22, %s1351_s22   ;;  %s1046_s21 = sphi %s1106_s21, %s1350_s21  }
   0x8   : > { %s1131_s27 = sadd.s32 1, %s1058_s24   ;;  %s140_s28 = sadd.s32 1, %s1054_s23 }
   0x9   : > { %s137_s29 = ssub.s32 %s1058_s24, %s1131_s27  ;;  %p150_p0 = scmp.ne.s32.totalorder %s1054_s23, %s1050_s22 }
   0xa   : > { %p138_p1 = scmp.eq.s32.totalorder %s137_s29, 0  ;;  %p151_p2 = scmp.eq.s32.totalorder %s1127_s25, 1 }
   0xb   : > { %p156_p3 = scmp.ne.s32.totalorder %s1050_s22, %s1046_s21  ;;  %p157_p4 = scmp.eq.s32.totalorder %s811_s26, 1 }
   0xc   : > { %s1142_s30 = scalar_select %p138_p1, %s1054_s23, %s140_s28  }
   0xd   : > { %p1144_p5 = por %p151_p2, %p150_p0  ;;  %p1148_p6 = por %p157_p4, %p156_p3 }
   0xe   : > { %p814_p7 = scmp.ge.s32.totalorder %s1058_s24, 1  ;;  %p220_p8 = scmp.lt.s32.totalorder %s1058_s24, 3 }
  0x10   : > { %p221_p9 = pnand %p814_p7, %p220_p8 }
  0x11   : > { %v946_v0 = vld [vmem:[%s1340_s1 + $0x4] ss:$8 sps:$4 sm:$0xff] (!%p221_p9)   ;;  %p254_p10 = scmp.lt.s32.totalorder (!%p221_p9), %s1127_s25, 1  ;;  %v948_v1 = vld [vmem:[%s1340_s1] ss:$8 sps:$4 sm:$0xff] (!%p221_p9)   ;;  %v1060_v2 = vmov (!%p221_p9), 0   ;;  %v267_v8 = vlaneseq (!%p221_p9) }
  0x12   : > { %224 = sbr.rel (%p221_p9) target bundleno = 1473 (0x5c1), region = 40  ;;  %333 = vmatprep.mubr.bf16.mxu0 (!%p221_p9), %v1060_v2  ;;  %301 = vmatprep.subr.bf16.mxu0 (!%p221_p9), %v946_v0  ;;  %v949_v3 = vld [vmem:[%s1340_s1 + $0x14] ss:$8 sps:$4 sm:$0xff] (!%p221_p9)   ;;  %v951_v4 = vld [vmem:[%s1340_s1 + $0x10] ss:$8 sps:$4 sm:$0xff] (!%p221_p9)   ;;  %s1349_s0 = sld [smem:[#allocation9_spill]] (!%p221_p9) }
  0x13   : > { %302 = vmatpush1.bf16.msra.mxu0 (!%p221_p9), %v948_v1  ;;  %vm297_vm0 = vcmask (!%p221_p9), 261120   ;;  %v1061_v7 = vmov (!%p221_p9), 0.0   ;;  %v268_v9 = vshrl.u32 (!%p221_p9), %v267_v8, 7  ;;  %v265_v11 = vld [vmem:[%s1341_s2] sm:$0x3] (!%p221_p9)  ;;  %s1178_s9 = sand.u32 (!%p221_p9), 1, %s1050_s22  }
  0x14   : > { %303 = vmatprep.subr.bf16.mxu0 (!%p221_p9), %v949_v3  ;;  %857 = vmatprep.subr.bf16.mxu1 (!%p221_p9), %v1061_v7  ;;  %vm1062_vm1 = vmmov (!%p221_p9), 0   ;;  %s816_s10 = sshll.u32 (!%p221_p9), %s1178_s9, 5  ;;  %vm422_vm2 = vcmask (!%p221_p9), 1043456   ;;  %s1063_s12 = smov (!%p221_p9), 96   ;;  %v345_v29 = vand.u32 (!%p221_p9), 127, %v267_v8  ;;  %vm405_vm4 = vcmask (!%p221_p9), 64512  }
  0x15   : > { %v269_v10 = vsub.s32 (!%p221_p9), 0, %v268_v9  ;;  %v273_v12 = vsub.s32 (!%p221_p9), 1, %v268_v9  ;;  %859 = vmatprep.mubr.msk.bf16.mxu1 (!%p221_p9), %vm1062_vm1, %v1061_v7  ;;  %s1191_s11 = scalar_lea.vmem (!%p221_p9), [#allocation5], %s816_s10  ;;  %s1064_s13 = smov (!%p221_p9), 64   ;;  %v952_v63 = vld [vmem:[%s1342_s3] sm:$0xff] (!%p221_p9)   ;;  %v953_v0 = vld [vmem:[%s1342_s3 + $0x8] sm:$0xff] (!%p221_p9)  }
  0x16   : > { %s1065_s14 = smov (!%p221_p9), 32   ;;  %vm346_vm3 = vcmp.gt.s32.totalorder (!%p221_p9), %v345_v29, %v268_v9  ;;  %v954_v1 = vld [vmem:[%s1342_s3 + $0x10] sm:$0xff] (!%p221_p9)   ;;  %vm467_vm5 = vcmask (!%p221_p9), 257024   ;;  %vm599_vm6 = vcmask (!%p221_p9), 519424   ;;  %vm641_vm7 = vcmask (!%p221_p9), 523264   ;;  %s717_s29 = sshll.u32 (!%p221_p9), %s1191_s11, 4  ;;  %s1253_s29 = int_to_ptr.vmem [resolvable:$true] %s717_s29 }
  0x17   : > { %304 = vmatpush1.bf16.msra.mxu0 (!%p221_p9), %v951_v4  ;;  %v270_v13 = vrot.slane (!%p221_p9), %v265_v11, %v269_v10  ;;  %v274_v14 = vrot.slane (!%p221_p9), %v265_v11, %v273_v12  ;;  %s839_s10 = sshll.u32 (!%p221_p9), %s1127_s25, 7  ;;  %s964_s16 = scalar_lea.vmem (!%p221_p9), %s1253_s29, 512 }
  0x18   : > { %863 = vmatprep.subr.bf16.mxu0 (!%p221_p9), %v1061_v7  ;;  %p965_p11 = scmp.ne.s32.totalorder (!%p221_p9), %s1253_s29, %s964_s16  ;;  %s1066_s17 = smov (!%p221_p9), [#allocation5]  }
  0x19   : > { %s255_s15 = scalar_select %p254_p10, %s1127_s25, 1 }
  0x1a   : > { %p966_p12 = pnand %p965_p11, %p1144_p5 }
  0x1b   : > { %s817_s18 = sshll.u32 %s255_s15, 3  ;;  %s692_s15 = scalar_lea.sflag [#allocation6], %s1178_s9 }
  0x1c   : > { %s257_s26 = scalar_lea.vmem %s1349_s0, %s817_s18  ;;  %p967_p13 = pneg %p966_p12 }
  0x1d   : > { %v259_v5 = vld [vmem:[%s257_s26] sm:$0xff] }
  0x1e   : > { %v260_v6 = vpack.c.bf16 %v259_v5, %v259_v5 }
  0x20   : > { %822 = vmatmul.mubr.msk.bf16.vlgmr.msra.gmra.mrb[0].mxu0 %vm297_vm0, %v260_v6  ;;  %v955_v6 = vld [vmem:[%s1342_s3 + $0x18] sm:$0xff]  }
  0x21   : > { %865 = vmatprep.mubr.msk.bf16.mxu0 %vm1062_vm1, %v1061_v7 }
  0xf3   : > { %v335_v15 = vpop.f32.mrb[0].mxu0 }
  0xf4   : > { %v1185_v16 = vadd.f32 %v335_v15, %v270_v13  ;;  %v337_v17 = vpop.f32.mrb[1].mxu0 }
  0xf5   : > { %v1187_v18 = vadd.f32 %v337_v17, %v274_v14  ;;  %v339_v19 = vpop.f32.mrb[2].mxu0 }
  0xf6   : > { %v354_v20 = vpack.c.bf16 %v1185_v16, %v1185_v16  ;;  %v340_v21 = vpop.f32.mrb[3].mxu0 }
  0xf7   : > { %823 = vst.msk [vmem:[%s1191_s11 + $0x8] sm:$0xff] %vm297_vm0, %v1187_v18  ;;  %v418_v22 = vpack.c.bf16 %v1187_v18, %v1187_v18 }
  0xf8   : > { %480 = vrot.lane.b32.xlu1 %v354_v20, %s1063_s12  ;;  %356 = vrot.lane.b32.xlu0 %v354_v20, %s1064_s13 }
  0xf9   : > { %v424_v23 = vsel %vm422_vm2, %v418_v22, 0 }
  0xfa   : > { %864 = vmatpush3.bf16.msra.mxu0 %v424_v23 }
  0xfb   : > { %875 = vmatprep.subr.bf16.mxu0 %v1061_v7 }
  0xfc   : > { %482 = vrot.lane.b32.xlu0 %v354_v20, %s1065_s14 }
 0x16a   : > { %v357_v24 = vpop.permute.xlu0 %356  ;;  %v481_v28 = vpop.permute.xlu1 %480 }
 0x16b   : > { %v362_v25 = vsel %vm297_vm0, %v357_v24, 0 }
 0x16c   : > { %858 = vmatpush3.bf16.xpose.msra.mxu1 %v362_v25 }
 0x16d   : > { %869 = vmatprep.subr.bf16.mxu1 %v1061_v7 }
 0x16e   : > { %v483_v26 = vpop.permute.xlu0 %482 }
 0x16f   : > { %v488_v27 = vsel %vm297_vm0, %v483_v26, 0 }
 0x173   : > { %860 = vmatmul.mubr.msk.bf16.vlgmr.msra.gmra.mrb[0].mxu1 %vm297_vm0, %v354_v20 }
 0x174   : > { %870 = vmatpush3.bf16.xpose.msra.mxu1 %v488_v27  ;;  %871 = vmatprep.mubr.msk.bf16.mxu1 %vm1062_vm1, %v1061_v7 }
 0x175   : > { %881 = vmatprep.subr.bf16.mxu1 %v1061_v7 }
 0x17b   : > { %872 = vmatmul.mubr.msk.bf16.vlgmr.msra.gmra.mrb[4].mxu1 %vm297_vm0, %v481_v28 }
 0x17c   : > { %889 = vmatprep.mubr.msk.bf16.mxu1 %vm1062_vm1, %v1061_v7  ;;  %882 = vmatpush3.bf16.msra.mxu1 %v952_v63 }
 0x17d   : > { %883 = vmatprep.subr.bf16.mxu1 %v1061_v7 }
 0x180   : > { %884 = vmatpush3.bf16.msra.mxu1 %v953_v0 }
 0x181   : > { %885 = vmatprep.subr.bf16.mxu1 %v1061_v7 }
 0x184   : > { %886 = vmatpush3.bf16.msra.mxu1 %v954_v1 }
 0x185   : > { %887 = vmatprep.subr.bf16.mxu1 %v1061_v7 }
 0x188   : > { %888 = vmatpush3.bf16.msra.mxu1 %v955_v6 }
 0x246   : > { %v398_v30 = vpop.f32.mrb[0].mxu1 }
 0x247   : > { %v404_v31 = vsel %vm346_vm3, -1e+30, %v398_v30  ;;  %v861_v32 = vpop.f32.mrb[1].mxu1 }
 0x248   : > { %v401_v33 = vpop.f32.mrb[2].mxu1  ;;  %v406_v34 = vsel %vm405_vm4, %v404_v31, -inf }
 0x249   : > { %407 = vmax.xlane.f32.xlu1 %v406_v34  ;;  %v862_v35 = vpop.f32.mrb[3].mxu1 }
 0x24e   : > { %v524_v36 = vpop.f32.mrb[4].mxu1 }
 0x24f   : > { %v530_v37 = vsel %vm346_vm3, -1e+30, %v524_v36  ;;  %v873_v38 = vpop.f32.mrb[5].mxu1 }
 0x250   : > { %v527_v39 = vpop.f32.mrb[6].mxu1  ;;  %v531_v40 = vsel %vm405_vm4, %v530_v37, -inf }
 0x251   : > { %532 = vmax.xlane.f32.xlu0 %v531_v40  ;;  %v874_v41 = vpop.f32.mrb[7].mxu1 }
 0x2d6   : > { %v408_v42 = vpop.xlane.xlu1 %407 }
 0x2d7   : > { %v409_v43 = vsub.f32 %v404_v31, %v408_v42 }
 0x2d9   : > { %v410_v44 = vmul.f32 1.442695, %v409_v43 }
 0x2db   : > { %956 = vpow2.f32 %v410_v44 }
 0x2de   : > { %v533_v45 = vpop.xlane.xlu0 %532 }
 0x2df   : > { %v534_v46 = vsub.f32 %v530_v37, %v533_v45 }
 0x2e1   : > { %v535_v47 = vmul.f32 1.442695, %v534_v46 }
 0x2e3   : > { %958 = vpow2.f32 %v535_v47 }
 0x2e5   : > { %v957_v48 = vpop.eup %956 }
 0x2e6   : > { %v412_v49 = vsel %vm405_vm4, %v957_v48, 0.0 }
 0x2e7   : > { %413 = vadd.xlane.f32.xlu0 %v412_v49 }
 0x2ed   : > { %v959_v50 = vpop.eup %958 }
 0x2ee   : > { %v537_v51 = vsel %vm405_vm4, %v959_v50, 0.0 }
 0x2ef   : > { %538 = vadd.xlane.f32.xlu1 %v537_v51 }
 0x2fd   : > { %544 = vrot.lane.b32.xlu0 %v418_v22, %s1063_s12 }
 0x301   : > { %469 = vrot.lane.b32.xlu0 %v1185_v16, %s1065_s14 }
 0x374   : > { %v414_v52 = vpop.xlane.xlu0 %413 }
 0x375   : > { %960 = vrcp.f32 %v414_v52 }
 0x378   : > { %v545_v53 = vpop.permute.xlu0 %544 }
 0x379   : > { %v550_v59 = vsel %vm422_vm2, %v545_v53, 0 }
 0x37c   : > { %v539_v54 = vpop.xlane.xlu1 %538  ;;  %v470_v55 = vpop.permute.xlu0 %469 }
 0x37d   : > { %962 = vrcp.f32 %v539_v54  ;;  %826 = vst.msk [vmem:[%s1191_s11 + $0x10] sm:$0xff] %vm297_vm0, %v470_v55 }
 0x37f   : > { %v961_v56 = vpop.eup %960 }
 0x380   : > { %v416_v57 = vmul.f32 %v961_v56, %v957_v48 }
 0x382   : > { %v417_v58 = vpack.c.bf16 %v416_v57, %v416_v57 }
 0x384   : > { %866 = vmatmul.mubr.msk.bf16.vlgmr.msra.gmra.mrb[4].mxu0 %vm405_vm4, %v417_v58 }
 0x385   : > { %876 = vmatpush3.bf16.msra.mxu0 %v550_v59  ;;  %877 = vmatprep.mubr.msk.bf16.mxu0 %vm1062_vm1, %v1061_v7 }
 0x387   : > { %v963_v60 = vpop.eup %962 }
 0x388   : > { %v541_v61 = vmul.f32 %v963_v60, %v959_v50 }
 0x38a   : > { %v542_v62 = vpack.c.bf16 %v541_v61, %v541_v61 }
 0x38c   : > { %878 = vmatmul.mubr.msk.bf16.vlgmr.msra.gmra.mrb[8].mxu0 %vm405_vm4, %v542_v62 }
 0x457   : > { %v460_v2 = vpop.f32.mrb[4].mxu0 }
 0x458   : > { %v466_v3 = vpack.c.bf16 %v460_v2, %v460_v2  ;;  %v867_v4 = vpop.f32.mrb[5].mxu0 }
 0x459   : > { %v463_v5 = vpop.f32.mrb[6].mxu0 }
 0x45a   : > { %468 = vst.msk [vmem:[#allocation2] sm:$0xf] %vm467_vm5, %v466_v3  ;;  %v868_v8 = vpop.f32.mrb[7].mxu0 }
 0x45f   : > { %v586_v9 = vpop.f32.mrb[8].mxu0 }
 0x460   : > { %v843_v10 = vpack.c.bf16 %v586_v9, %v586_v9  ;;  %v879_v11 = vpop.f32.mrb[9].mxu0 }
 0x461   : > { %v589_v12 = vpop.f32.mrb[10].mxu0 }
 0x462   : > { %596 = vrot.lane.b32.xlu1 %v843_v10, %s1065_s14  ;;  %v880_v13 = vpop.f32.mrb[11].mxu0  ;;  %s1260_s14 = scalar_lea.hbm %s1345_s6, %s839_s10 }
 0x466   : > { %348 = vrot.lane.b32.xlu1 %v1185_v16, %s1064_s13 }
 0x46a   : > { %475 = vrot.lane.b32.xlu1 %v1187_v18, %s1063_s12 }
 0x4d4   : > { %v597_v7 = vpop.permute.xlu1 %596 }
 0x4d5   : > { %600 = vst.msk [vmem:[#allocation2] sm:$0xf] %vm599_vm6, %v597_v7 }
 0x4d8   : > { %v349_v14 = vpop.permute.xlu1 %348 }
 0x4d9   : > { %351 = vst.msk [vmem:[%s1191_s11] sm:$0xff] %vm297_vm0, %v349_v14 }
 0x4dc   : > { %v476_v15 = vpop.permute.xlu1 %475  ;;  %v601_v17 = vld [vmem:[#allocation2] sm:$0xf] }
 0x4dd   : > { %827 = vst.msk [vmem:[%s1191_s11 + $0x18] sm:$0xff] %vm297_vm0, %v476_v15  ;;  %890 = vmatmul.mubr.msk.bf16.vlgmr.msra.gmra.mrb[8].mxu1 %vm641_vm7, %v601_v17  ;;  %s968_s11 = sshll.u32 %s1066_s17, 4  ;;  %s969_s11 = int_to_ptr.vmem [resolvable:$false] %s968_s11 }
 0x4de   : > { %s970_s18 = scalar_lea.vmem %s969_s11, 1024  ;;  %p971_p0 = scmp.lt.s32.totalorder %s1253_s29, %s969_s11 }
 0x4df   : > { %p972_p1 = scmp.lt.s32.totalorder %s970_s18, %s964_s16 }
 0x4e1   : > { %p973_p2 = por %p972_p1, %p971_p0 }
 0x4e3   : > { %p974_p3 = pnand %p973_p2, %p967_p13 }
 0x4e5   : > { %977 = shalt.err (!%p974_p3)
}
 0x4e6   : > { %s978_s19 = scalar_lea.hbm %s1260_s14, 512  ;;  %s982_s28 = scalar_lea.hbm %s1345_s6, 1024 }
 0x4e7   : > { %p979_p4 = scmp.ne.s32.totalorder %s1260_s14, %s978_s19  ;;  %p983_p9 = scmp.lt.u32.totalorder %s1260_s14, %s1345_s6 }
 0x4e8   : > { %p984_p10 = scmp.lt.u32.totalorder %s982_s28, %s978_s19  ;;  %p986_p12 = scmp.lt.u32.totalorder %s978_s19, %s1260_s14 }
 0x4e9   : > { %p980_p7 = pnand %p979_p4, %p1144_p5 }
 0x4ea   : > { %p985_p11 = por %p984_p10, %p983_p9 }
 0x4eb   : > { %p981_p8 = pneg %p980_p7 }
 0x4ec   : > { %p987_p13 = por %p986_p12, %p985_p11 }
 0x4ee   : > { %p988_p0 = pnand %p987_p13, %p981_p8 }
 0x4f0   : > { %991 = shalt.err (!%p988_p0)
}
 0x4f1   : > { %s1067_s16 = smov 128   ;;  %s1068_s17 = smov 256   ;;  %v831_v16 = vld [vmem:[%s1343_s4] ss:$0 sm:$0xff] }
 0x4f2   : > { %s1069_s11 = smov 8   ;;  %s815_s18 = sshll.u32 %s1178_s9, 3 }
 0x4f3   : > { %894 = dma.vmem_to_hbm [thread:$0]  (%p1144_p5), %s1253_s29, 512, %s1260_s14, %s692_s15, %s1067_s16, %s1068_s17, %s1069_s11  }
 0x4f4   : > { %s246_s26 = scalar_lea.vmem [#allocation3], %s815_s18  ;;  %s1295_s0 = scalar_lea.hbm %s1344_s5, %s839_s10 }
 0x4f5   : > { %s705_s28 = sshll.u32 %s246_s26, 4  ;;  %s687_s29 = scalar_lea.sflag [#allocation4], %s1178_s9  ;;  %s1297_s28 = int_to_ptr.vmem [resolvable:$true] %s705_s28 }
 0x4f6   : > { %s992_s14 = scalar_lea.vmem %s1297_s28, 128  ;;  %s1070_s25 = smov [#allocation3]  }
 0x4f7   : > { %p993_p1 = scmp.ne.s32.totalorder %s1297_s28, %s992_s14  ;;  %s996_s15 = sshll.u32 %s1070_s25, 4  ;;  %s997_s15 = int_to_ptr.vmem [resolvable:$false] %s996_s15 }
 0x4f8   : > { %s998_s10 = scalar_lea.vmem %s997_s15, 256  ;;  %p999_p4 = scmp.lt.s32.totalorder %s1297_s28, %s997_s15 }
 0x4f9   : > { %p994_p2 = pnand %p993_p1, %p1144_p5  ;;  %p1000_p7 = scmp.lt.s32.totalorder %s998_s10, %s992_s14 }
 0x4fb   : > { %p995_p3 = pneg %p994_p2  ;;  %p1001_p8 = por %p1000_p7, %p999_p4 }
 0x4fd   : > { %p1002_p9 = pnand %p1001_p8, %p995_p3 }
 0x5b0   : > { %v679_v18 = vpop.f32.mrb[8].mxu1 }
 0x5b1   : > { %v680_v19 = vadd.f32 %v831_v16, %v679_v18  ;;  %v891_v20 = vpop.f32.mrb[9].mxu1 }
 0x5b2   : > { %v682_v21 = vpop.f32.mrb[10].mxu1 }
 0x5b3   : > { %v892_v22 = vpop.f32.mrb[11].mxu1  ;;  %685 = vst.msk [vmem:[%s246_s26] sm:$0xff] %vm297_vm0, %v680_v19 }
 0x5b4   : > { %1005 = shalt.err (!%p1002_p9)
}
 0x5b5   : > { %s1006_s9 = scalar_lea.hbm %s1295_s0, 128  ;;  %s1010_s11 = scalar_lea.hbm %s1344_s5, 256 }
 0x5b6   : > { %p1007_p10 = scmp.ne.s32.totalorder %s1295_s0, %s1006_s9  ;;  %p1011_p13 = scmp.lt.u32.totalorder %s1295_s0, %s1344_s5 }
 0x5b7   : > { %p1012_p0 = scmp.lt.u32.totalorder %s1010_s11, %s1006_s9  ;;  %p1014_p2 = scmp.lt.u32.totalorder %s1006_s9, %s1295_s0 }
 0x5b8   : > { %p1008_p11 = pnand %p1007_p10, %p1144_p5 }
 0x5b9   : > { %p1013_p1 = por %p1012_p0, %p1011_p13 }
 0x5ba   : > { %p1009_p12 = pneg %p1008_p11 }
 0x5bb   : > { %p1015_p3 = por %p1014_p2, %p1013_p1 }
 0x5bd   : > { %p1016_p4 = pnand %p1015_p3, %p1009_p12 }
 0x5bf   : > { %1019 = shalt.err (!%p1016_p4)
}
 0x5c0   : > { %893 = dma.vmem_to_hbm [thread:$0]  (%p1144_p5), %s1297_s28, 128, %s1295_s0, %s687_s29  }
 0x5c1 PF: > { %p904_p7 = scmp.ge.s32.totalorder %s1058_s24, 2  ;;  %s732_s19 = sand.u32 1, %s1046_s21  }
 0x5c2   : > { %s733_s26 = scalar_lea.sflag [#allocation4], %s732_s19 }
 0x5c3   : > { %p898_p8 = pnand %p904_p7, %p1148_p6 }
 0x5c5   : > { %1037 = dma.done.wait (!%p898_p8), %s733_s26, 128  }
 0x5c6   : > { %1039 = vsyncadd (!%p898_p8), %s733_s26, 4294967168  ;;  %s742_s13 = scalar_lea.sflag [#allocation6], %s732_s19 }
 0x5c7   : > { %1041 = dma.done.wait (!%p898_p8), %s742_s13, 512  }
 0x5c8   : > { %1043 = vsyncadd (!%p898_p8), %s742_s13, 4294966784  ;;  %p20_p5 = scmp.ge.s32.totalorder %s1131_s27, 4   ;;  %s1350_s21 = smov %s1050_s22 }
 0x5c9   : > { %s1351_s22 = smov %s1054_s23  ;;  %s1352_s23 = smov %s1142_s30 }
 0x5ca   : > { %s1353_s24 = smov %s1131_s27  ;;  %22 = sbr.rel (!%p20_p5) target bundleno = 7 (0x7), region = 95 }
 0x5d1   :  { %747 = vsyncpa [#allocation4], 1 }
 0x5d2   :  { %749 = vsyncpa [#allocation4 + $0x1], 1 }
 0x5d3   :  { %750 = vsyncpa [#allocation6], 1 }
 0x5d4   :  { %752 = vsyncpa [#allocation6 + $0x1], 1 }

</bundles_post_ra>
